<compile_context>
chip_gen: v7x
topology: tpu7x:2x2x1
jax: 0.10.0
libtpu: 0.0.40
codegen_flags: <defaults>
</compile_context>

<pallas_src>
import functools

import jax
import jax.numpy as jnp
from jax.experimental import pallas as pl
from jax.experimental.pallas import tpu as pltpu

KSZ = 5  # Conv2d kernel_size


def _pick_tile_rows(n_pix):
    """Output-row tile height.

    Must divide n_pix and (to satisfy the (8,128) block rule) be a multiple of
    8 unless it equals n_pix. Prefer >= 2 grid steps so the output writeback
    overlaps compute.
    """
    for th in (32, 16, 8):
        if n_pix % th == 0 and n_pix // th >= 2:
            return th
    for th in (32, 16, 8):
        if n_pix % th == 0:
            return th
    return n_pix  # single full-size block (always a legal BlockSpec)


def _mfconv_kernel(w_ref, img_ref, out_ref, slab_ref, *,
                   n_comps, n_pix, th, k_data, k_pad, img_h):
    """One grid step: output rows [i*th, (i+1)*th) for every coefficient.

    w_ref    : (n_coeffs*th, k_pad)      folded banded weight (resident)
    img_ref  : (n_comps*img_h, img_h)    image, channel-major rows (resident)
    out_ref  : (n_coeffs, th, n_pix)     output tile
    slab_ref : (k_pad, n_pix)            VMEM scratch: shifted image slabs
    """
    rows_in = th + KSZ - 1
    y0 = pl.program_id(0) * th
    if th % 8 == 0:
        y0 = pl.multiple_of(y0, 8)

    # Gather the 5 x-shifted, (th+4)-row windows of every input channel into
    # the contraction slab:
    #   slab[(kx*n_comps + ic)*rows_in + r, x] = img[ic, y0 + r, x + kx]
    for kx in range(KSZ):
        for ic in range(n_comps):
            r0 = (kx * n_comps + ic) * rows_in
            slab_ref[r0:r0 + rows_in, :] = img_ref[
                pl.ds(ic * img_h + y0, rows_in), pl.ds(kx, n_pix)]

    # Constant rows, rewritten every step (no carried state -> "parallel" safe):
    # one row of ones carries the folded bias through the matmul, the rest is
    # zero padding up to the 128-aligned contraction size.
    slab_ref[k_data:k_data + 1, :] = jnp.ones((1, n_pix), jnp.float32)
    if k_pad > k_data + 1:
        slab_ref[k_data + 1:k_pad, :] = jnp.zeros(
            (k_pad - k_data - 1, n_pix), jnp.float32)

    # Single fused MXU matmul: conv taps + coefficient mix + bias in one shot.
    acc = jnp.dot(w_ref[...], slab_ref[...],
                  preferred_element_type=jnp.float32)

    # acc rows are ordered (coefficient, row-in-tile); store per coefficient.
    n_coeffs = out_ref.shape[0]
    for c in range(n_coeffs):
        out_ref[c, :, :] = acc[c * th:(c + 1) * th, :].astype(out_ref.dtype)


def _build_folded_weight(cfs, conv_w, conv_b, *, n_comps, th, k_data, k_pad):
    """Fold cfs + bias into a banded conv weight matching the kernel's slab."""
    n_coeffs = cfs.shape[0]
    rows_in = th + KSZ - 1

    wf = jnp.einsum('co,oikl->cikl', cfs, conv_w)     # (n_coeffs, n_comps, 5, 5)
    bf = cfs @ conv_b                                 # (n_coeffs,)

    # Banded layout: W[c*th + t, (kx*n_comps + ic)*rows_in + (t + ky)]
    #                  = wf[c, ic, ky, kx]
    wf_t = jnp.transpose(wf, (0, 3, 1, 2))            # (c, kx, ic, ky)
    w5 = jnp.zeros((n_coeffs, th, KSZ, n_comps, rows_in), jnp.float32)
    for t in range(th):
        w5 = w5.at[:, t, :, :, t:t + KSZ].set(wf_t)
    w2d = w5.reshape(n_coeffs * th, k_data)

    # Bias column (hits the all-ones slab row) + zero padding to k_pad columns.
    bias_col = jnp.repeat(bf, th)[:, None].astype(jnp.float32)
    pad = jnp.zeros((n_coeffs * th, k_pad - k_data - 1), jnp.float32)
    return jnp.concatenate([w2d, bias_col, pad], axis=1)  # (n_coeffs*th, k_pad)


@functools.partial(jax.jit, static_argnames=("n_comps", "n_pix"))
def mfconv_forward(cfs, conv_w, conv_b, cmps, *, n_comps, n_pix):
    n_coeffs = cfs.shape[0]
    img_h = n_pix + KSZ - 1                           # n_pix + 4
    th = _pick_tile_rows(n_pix)
    rows_in = th + KSZ - 1
    k_data = KSZ * n_comps * rows_in
    k_pad = ((k_data + 1 + 127) // 128) * 128         # 128-aligned contraction

    w = _build_folded_weight(cfs, conv_w, conv_b,
                             n_comps=n_comps, th=th, k_data=k_data, k_pad=k_pad)

    # Free (metadata-only) reshape -- NOT an im2col copy.
    img = cmps.reshape(n_comps * img_h, img_h)

    kernel = functools.partial(
        _mfconv_kernel, n_comps=n_comps, n_pix=n_pix, th=th,
        k_data=k_data, k_pad=k_pad, img_h=img_h)

    out3 = pl.pallas_call(
        kernel,
        out_shape=jax.ShapeDtypeStruct((n_coeffs, n_pix, n_pix), jnp.float32),
        grid_spec=pltpu.PrefetchScalarGridSpec(
            num_scalar_prefetch=0,
            grid=(n_pix // th,),
            in_specs=[
                # Folded banded weight: tiny, resident (loaded once).
                pl.BlockSpec((n_coeffs * th, k_pad), lambda i: (0, 0)),
                # Whole image resident in VMEM (it is the small operand:
                # ~n_comps*(n_pix+4)^2 f32, well under the 32 MiB scoped limit
                # for any realistic n_pix of this module).
                pl.BlockSpec((n_comps * img_h, img_h), lambda i: (0, 0)),
            ],
            out_specs=pl.BlockSpec((n_coeffs, th, n_pix), lambda i: (0, i, 0)),
            scratch_shapes=[pltpu.VMEM((k_pad, n_pix), jnp.float32)],
        ),
        compiler_params=pltpu.CompilerParams(
            dimension_semantics=("parallel",),
        ),
    )(w, img)

    # Free reshape back to the PyTorch view: (n_coeffs, n_pix**2).
    return out3.reshape(n_coeffs, n_pix * n_pix)


def reference_forward(cfs, conv_w, conv_b, cmps, n_comps, n_pix):
    """Pure-JAX reference (lax conv) for the correctness check."""
    conv = jax.lax.conv_general_dilated(
        cmps, conv_w, window_strides=(1, 1), padding="VALID",
        dimension_numbers=("NCHW", "OIHW", "NCHW"),
        precision=jax.lax.Precision.HIGHEST,
    ) + conv_b.reshape(1, -1, 1, 1)
    conv_flat = conv.reshape(2 * n_comps, n_pix * n_pix)
    return jnp.dot(cfs, conv_flat, precision=jax.lax.Precision.HIGHEST)


if __name__ == "__main__":
    # Small deterministic setup consistent with the module's __init__.
    n_coeffs, n_comps, n_pix = 8, 4, 16
    key = jax.random.PRNGKey(0)
    k1, k2, k3, k4 = jax.random.split(key, 4)

    # torch.rand -> uniform [0, 1)
    cfs = jax.random.uniform(k1, (n_coeffs, 2 * n_comps), dtype=jnp.float32)
    cmps = jax.random.uniform(
        k2, (1, n_comps, n_pix + 4, n_pix + 4), dtype=jnp.float32)
    # Conv2d(n_comps, 2*n_comps, 5) params (deterministic synthetic init).
    fan_in = n_comps * KSZ * KSZ
    bound = 1.0 / (fan_in ** 0.5)
    conv_w = jax.random.uniform(
        k3, (2 * n_comps, n_comps, KSZ, KSZ), minval=-bound, maxval=bound,
        dtype=jnp.float32)
    conv_b = jax.random.uniform(
        k4, (2 * n_comps,), minval=-bound, maxval=bound, dtype=jnp.float32)

    out = mfconv_forward(cfs, conv_w, conv_b, cmps, n_comps=n_comps, n_pix=n_pix)
    out = jax.block_until_ready(out)

    ref = reference_forward(cfs, conv_w, conv_b, cmps, n_comps, n_pix)
    ref = jax.block_until_ready(ref)

    assert out.shape == (n_coeffs, n_pix * n_pix)
    max_err = float(jnp.max(jnp.abs(out - ref)))
    # Weight folding reassociates the reduction, so allow a slightly looser
    # tolerance than bit-level f32 (values are O(1)).
    assert max_err < 1e-3, f"max abs error {max_err}"
    print("KERNEL_OK")
</pallas_src>

<mosaic_0001>
module attributes {stable_mosaic.version = 11 : i64} {
  func.func @_mfconv_kernel(%arg0: i32, %arg1: memref<64x256xf32, #tpu.memory_space<vmem>>, %arg2: memref<80x20xf32, #tpu.memory_space<vmem>>, %arg3: memref<8x8x16xf32, #tpu.memory_space<vmem>>, %arg4: memref<256x16xf32, #tpu.memory_space<vmem>>) attributes {dimension_semantics = [#tpu.dimension_semantics<parallel>], iteration_bounds = array<i64: 2>, scalar_prefetch = 0 : i64, scratch_operands = 1 : i64, tpu.core_type = #tpu.core_type<tc>, window_params = [{pipeline_mode = #tpu.pipeline_mode<synchronous>, transform_indices = @transform_0, window_bounds = array<i64: 64, 256>}, {pipeline_mode = #tpu.pipeline_mode<synchronous>, transform_indices = @transform_1, window_bounds = array<i64: 80, 20>}, {transform_indices = @transform_2, window_bounds = array<i64: 8, 8, 16>}]} {
    %c8_i32 = arith.constant 8 : i32
    %0 = arith.muli %arg0, %c8_i32 : i32
    %1 = tpu.assume_multiple %0, 8 : i32
    %c0_i32 = arith.constant 0 : i32
    %2 = arith.addi %c0_i32, %1 : i32
    %3 = arith.index_cast %2 : i32 to index
    %c0 = arith.constant 0 : index
    %4 = vector.load %arg2[%3, %c0] : memref<80x20xf32, #tpu.memory_space<vmem>>, vector<12x16xf32>
    %c0_0 = arith.constant 0 : index
    %c0_1 = arith.constant 0 : index
    %5 = vector.load %arg4[%c0_0, %c0_1] : memref<256x16xf32, #tpu.memory_space<vmem>>, vector<12x16xf32>
    tpu.vector_store %arg4[%c0_0, %c0_1], %4 {strides = array<i32>} : memref<256x16xf32, #tpu.memory_space<vmem>>, vector<12x16xf32>,
    %c20_i32 = arith.constant 20 : i32
    %6 = arith.addi %c20_i32, %1 : i32
    %7 = arith.index_cast %6 : i32 to index
    %c0_2 = arith.constant 0 : index
    %8 = vector.load %arg2[%7, %c0_2] : memref<80x20xf32, #tpu.memory_space<vmem>>, vector<12x16xf32>
    %c12 = arith.constant 12 : index
    %c0_3 = arith.constant 0 : index
    %9 = vector.load %arg4[%c12, %c0_3] : memref<256x16xf32, #tpu.memory_space<vmem>>, vector<12x16xf32>
    tpu.vector_store %arg4[%c12, %c0_3], %8 {strides = array<i32>} : memref<256x16xf32, #tpu.memory_space<vmem>>, vector<12x16xf32>,
    %c40_i32 = arith.constant 40 : i32
    %10 = arith.addi %c40_i32, %1 : i32
    %11 = arith.index_cast %10 : i32 to index
    %c0_4 = arith.constant 0 : index
    %12 = vector.load %arg2[%11, %c0_4] : memref<80x20xf32, #tpu.memory_space<vmem>>, vector<12x16xf32>
    %c24 = arith.constant 24 : index
    %c0_5 = arith.constant 0 : index
    %13 = vector.load %arg4[%c24, %c0_5] : memref<256x16xf32, #tpu.memory_space<vmem>>, vector<12x16xf32>
    tpu.vector_store %arg4[%c24, %c0_5], %12 {strides = array<i32>} : memref<256x16xf32, #tpu.memory_space<vmem>>, vector<12x16xf32>,
    %c60_i32 = arith.constant 60 : i32
    %14 = arith.addi %c60_i32, %1 : i32
    %15 = arith.index_cast %14 : i32 to index
    %c0_6 = arith.constant 0 : index
    %16 = vector.load %arg2[%15, %c0_6] : memref<80x20xf32, #tpu.memory_space<vmem>>, vector<12x16xf32>
    %c36 = arith.constant 36 : index
    %c0_7 = arith.constant 0 : index
    %17 = vector.load %arg4[%c36, %c0_7] : memref<256x16xf32, #tpu.memory_space<vmem>>, vector<12x16xf32>
    tpu.vector_store %arg4[%c36, %c0_7], %16 {strides = array<i32>} : memref<256x16xf32, #tpu.memory_space<vmem>>, vector<12x16xf32>,
    %c0_i32_8 = arith.constant 0 : i32
    %18 = arith.addi %c0_i32_8, %1 : i32
    %19 = arith.index_cast %18 : i32 to index
    %c1 = arith.constant 1 : index
    %20 = vector.load %arg2[%19, %c1] : memref<80x20xf32, #tpu.memory_space<vmem>>, vector<12x16xf32>
    %c48 = arith.constant 48 : index
    %c0_9 = arith.constant 0 : index
    %21 = vector.load %arg4[%c48, %c0_9] : memref<256x16xf32, #tpu.memory_space<vmem>>, vector<12x16xf32>
    tpu.vector_store %arg4[%c48, %c0_9], %20 {strides = array<i32>} : memref<256x16xf32, #tpu.memory_space<vmem>>, vector<12x16xf32>,
    %c20_i32_10 = arith.constant 20 : i32
    %22 = arith.addi %c20_i32_10, %1 : i32
    %23 = arith.index_cast %22 : i32 to index
    %c1_11 = arith.constant 1 : index
    %24 = vector.load %arg2[%23, %c1_11] : memref<80x20xf32, #tpu.memory_space<vmem>>, vector<12x16xf32>
    %c60 = arith.constant 60 : index
    %c0_12 = arith.constant 0 : index
    %25 = vector.load %arg4[%c60, %c0_12] : memref<256x16xf32, #tpu.memory_space<vmem>>, vector<12x16xf32>
    tpu.vector_store %arg4[%c60, %c0_12], %24 {strides = array<i32>} : memref<256x16xf32, #tpu.memory_space<vmem>>, vector<12x16xf32>,
    %c40_i32_13 = arith.constant 40 : i32
    %26 = arith.addi %c40_i32_13, %1 : i32
    %27 = arith.index_cast %26 : i32 to index
    %c1_14 = arith.constant 1 : index
    %28 = vector.load %arg2[%27, %c1_14] : memref<80x20xf32, #tpu.memory_space<vmem>>, vector<12x16xf32>
    %c72 = arith.constant 72 : index
    %c0_15 = arith.constant 0 : index
    %29 = vector.load %arg4[%c72, %c0_15] : memref<256x16xf32, #tpu.memory_space<vmem>>, vector<12x16xf32>
    tpu.vector_store %arg4[%c72, %c0_15], %28 {strides = array<i32>} : memref<256x16xf32, #tpu.memory_space<vmem>>, vector<12x16xf32>,
    %c60_i32_16 = arith.constant 60 : i32
    %30 = arith.addi %c60_i32_16, %1 : i32
    %31 = arith.index_cast %30 : i32 to index
    %c1_17 = arith.constant 1 : index
    %32 = vector.load %arg2[%31, %c1_17] : memref<80x20xf32, #tpu.memory_space<vmem>>, vector<12x16xf32>
    %c84 = arith.constant 84 : index
    %c0_18 = arith.constant 0 : index
    %33 = vector.load %arg4[%c84, %c0_18] : memref<256x16xf32, #tpu.memory_space<vmem>>, vector<12x16xf32>
    tpu.vector_store %arg4[%c84, %c0_18], %32 {strides = array<i32>} : memref<256x16xf32, #tpu.memory_space<vmem>>, vector<12x16xf32>,
    %c0_i32_19 = arith.constant 0 : i32
    %34 = arith.addi %c0_i32_19, %1 : i32
    %35 = arith.index_cast %34 : i32 to index
    %c2 = arith.constant 2 : index
    %36 = vector.load %arg2[%35, %c2] : memref<80x20xf32, #tpu.memory_space<vmem>>, vector<12x16xf32>
    %c96 = arith.constant 96 : index
    %c0_20 = arith.constant 0 : index
    %37 = vector.load %arg4[%c96, %c0_20] : memref<256x16xf32, #tpu.memory_space<vmem>>, vector<12x16xf32>
    tpu.vector_store %arg4[%c96, %c0_20], %36 {strides = array<i32>} : memref<256x16xf32, #tpu.memory_space<vmem>>, vector<12x16xf32>,
    %c20_i32_21 = arith.constant 20 : i32
    %38 = arith.addi %c20_i32_21, %1 : i32
    %39 = arith.index_cast %38 : i32 to index
    %c2_22 = arith.constant 2 : index
    %40 = vector.load %arg2[%39, %c2_22] : memref<80x20xf32, #tpu.memory_space<vmem>>, vector<12x16xf32>
    %c108 = arith.constant 108 : index
    %c0_23 = arith.constant 0 : index
    %41 = vector.load %arg4[%c108, %c0_23] : memref<256x16xf32, #tpu.memory_space<vmem>>, vector<12x16xf32>
    tpu.vector_store %arg4[%c108, %c0_23], %40 {strides = array<i32>} : memref<256x16xf32, #tpu.memory_space<vmem>>, vector<12x16xf32>,
    %c40_i32_24 = arith.constant 40 : i32
    %42 = arith.addi %c40_i32_24, %1 : i32
    %43 = arith.index_cast %42 : i32 to index
    %c2_25 = arith.constant 2 : index
    %44 = vector.load %arg2[%43, %c2_25] : memref<80x20xf32, #tpu.memory_space<vmem>>, vector<12x16xf32>
    %c120 = arith.constant 120 : index
    %c0_26 = arith.constant 0 : index
    %45 = vector.load %arg4[%c120, %c0_26] : memref<256x16xf32, #tpu.memory_space<vmem>>, vector<12x16xf32>
    tpu.vector_store %arg4[%c120, %c0_26], %44 {strides = array<i32>} : memref<256x16xf32, #tpu.memory_space<vmem>>, vector<12x16xf32>,
    %c60_i32_27 = arith.constant 60 : i32
    %46 = arith.addi %c60_i32_27, %1 : i32
    %47 = arith.index_cast %46 : i32 to index
    %c2_28 = arith.constant 2 : index
    %48 = vector.load %arg2[%47, %c2_28] : memref<80x20xf32, #tpu.memory_space<vmem>>, vector<12x16xf32>
    %c132 = arith.constant 132 : index
    %c0_29 = arith.constant 0 : index
    %49 = vector.load %arg4[%c132, %c0_29] : memref<256x16xf32, #tpu.memory_space<vmem>>, vector<12x16xf32>
    tpu.vector_store %arg4[%c132, %c0_29], %48 {strides = array<i32>} : memref<256x16xf32, #tpu.memory_space<vmem>>, vector<12x16xf32>,
    %c0_i32_30 = arith.constant 0 : i32
    %50 = arith.addi %c0_i32_30, %1 : i32
    %51 = arith.index_cast %50 : i32 to index
    %c3 = arith.constant 3 : index
    %52 = vector.load %arg2[%51, %c3] : memref<80x20xf32, #tpu.memory_space<vmem>>, vector<12x16xf32>
    %c144 = arith.constant 144 : index
    %c0_31 = arith.constant 0 : index
    %53 = vector.load %arg4[%c144, %c0_31] : memref<256x16xf32, #tpu.memory_space<vmem>>, vector<12x16xf32>
    tpu.vector_store %arg4[%c144, %c0_31], %52 {strides = array<i32>} : memref<256x16xf32, #tpu.memory_space<vmem>>, vector<12x16xf32>,
    %c20_i32_32 = arith.constant 20 : i32
    %54 = arith.addi %c20_i32_32, %1 : i32
    %55 = arith.index_cast %54 : i32 to index
    %c3_33 = arith.constant 3 : index
    %56 = vector.load %arg2[%55, %c3_33] : memref<80x20xf32, #tpu.memory_space<vmem>>, vector<12x16xf32>
    %c156 = arith.constant 156 : index
    %c0_34 = arith.constant 0 : index
    %57 = vector.load %arg4[%c156, %c0_34] : memref<256x16xf32, #tpu.memory_space<vmem>>, vector<12x16xf32>
    tpu.vector_store %arg4[%c156, %c0_34], %56 {strides = array<i32>} : memref<256x16xf32, #tpu.memory_space<vmem>>, vector<12x16xf32>,
    %c40_i32_35 = arith.constant 40 : i32
    %58 = arith.addi %c40_i32_35, %1 : i32
    %59 = arith.index_cast %58 : i32 to index
    %c3_36 = arith.constant 3 : index
    %60 = vector.load %arg2[%59, %c3_36] : memref<80x20xf32, #tpu.memory_space<vmem>>, vector<12x16xf32>
    %c168 = arith.constant 168 : index
    %c0_37 = arith.constant 0 : index
    %61 = vector.load %arg4[%c168, %c0_37] : memref<256x16xf32, #tpu.memory_space<vmem>>, vector<12x16xf32>
    tpu.vector_store %arg4[%c168, %c0_37], %60 {strides = array<i32>} : memref<256x16xf32, #tpu.memory_space<vmem>>, vector<12x16xf32>,
    %c60_i32_38 = arith.constant 60 : i32
    %62 = arith.addi %c60_i32_38, %1 : i32
    %63 = arith.index_cast %62 : i32 to index
    %c3_39 = arith.constant 3 : index
    %64 = vector.load %arg2[%63, %c3_39] : memref<80x20xf32, #tpu.memory_space<vmem>>, vector<12x16xf32>
    %c180 = arith.constant 180 : index
    %c0_40 = arith.constant 0 : index
    %65 = vector.load %arg4[%c180, %c0_40] : memref<256x16xf32, #tpu.memory_space<vmem>>, vector<12x16xf32>
    tpu.vector_store %arg4[%c180, %c0_40], %64 {strides = array<i32>} : memref<256x16xf32, #tpu.memory_space<vmem>>, vector<12x16xf32>,
    %c0_i32_41 = arith.constant 0 : i32
    %66 = arith.addi %c0_i32_41, %1 : i32
    %67 = arith.index_cast %66 : i32 to index
    %c4 = arith.constant 4 : index
    %68 = vector.load %arg2[%67, %c4] : memref<80x20xf32, #tpu.memory_space<vmem>>, vector<12x16xf32>
    %c192 = arith.constant 192 : index
    %c0_42 = arith.constant 0 : index
    %69 = vector.load %arg4[%c192, %c0_42] : memref<256x16xf32, #tpu.memory_space<vmem>>, vector<12x16xf32>
    tpu.vector_store %arg4[%c192, %c0_42], %68 {strides = array<i32>} : memref<256x16xf32, #tpu.memory_space<vmem>>, vector<12x16xf32>,
    %c20_i32_43 = arith.constant 20 : i32
    %70 = arith.addi %c20_i32_43, %1 : i32
    %71 = arith.index_cast %70 : i32 to index
    %c4_44 = arith.constant 4 : index
    %72 = vector.load %arg2[%71, %c4_44] : memref<80x20xf32, #tpu.memory_space<vmem>>, vector<12x16xf32>
    %c204 = arith.constant 204 : index
    %c0_45 = arith.constant 0 : index
    %73 = vector.load %arg4[%c204, %c0_45] : memref<256x16xf32, #tpu.memory_space<vmem>>, vector<12x16xf32>
    tpu.vector_store %arg4[%c204, %c0_45], %72 {strides = array<i32>} : memref<256x16xf32, #tpu.memory_space<vmem>>, vector<12x16xf32>,
    %c40_i32_46 = arith.constant 40 : i32
    %74 = arith.addi %c40_i32_46, %1 : i32
    %75 = arith.index_cast %74 : i32 to index
    %c4_47 = arith.constant 4 : index
    %76 = vector.load %arg2[%75, %c4_47] : memref<80x20xf32, #tpu.memory_space<vmem>>, vector<12x16xf32>
    %c216 = arith.constant 216 : index
    %c0_48 = arith.constant 0 : index
    %77 = vector.load %arg4[%c216, %c0_48] : memref<256x16xf32, #tpu.memory_space<vmem>>, vector<12x16xf32>
    tpu.vector_store %arg4[%c216, %c0_48], %76 {strides = array<i32>} : memref<256x16xf32, #tpu.memory_space<vmem>>, vector<12x16xf32>,
    %c60_i32_49 = arith.constant 60 : i32
    %78 = arith.addi %c60_i32_49, %1 : i32
    %79 = arith.index_cast %78 : i32 to index
    %c4_50 = arith.constant 4 : index
    %80 = vector.load %arg2[%79, %c4_50] : memref<80x20xf32, #tpu.memory_space<vmem>>, vector<12x16xf32>
    %c228 = arith.constant 228 : index
    %c0_51 = arith.constant 0 : index
    %81 = vector.load %arg4[%c228, %c0_51] : memref<256x16xf32, #tpu.memory_space<vmem>>, vector<12x16xf32>
    tpu.vector_store %arg4[%c228, %c0_51], %80 {strides = array<i32>} : memref<256x16xf32, #tpu.memory_space<vmem>>, vector<12x16xf32>,
    %cst = arith.constant 1.000000e+00 : f32
    %82 = vector.broadcast %cst : f32 to vector<1x16xf32>
    %c240 = arith.constant 240 : index
    %c0_52 = arith.constant 0 : index
    %83 = vector.load %arg4[%c240, %c0_52] : memref<256x16xf32, #tpu.memory_space<vmem>>, vector<1x16xf32>
    tpu.vector_store %arg4[%c240, %c0_52], %82 {strides = array<i32>} : memref<256x16xf32, #tpu.memory_space<vmem>>, vector<1x16xf32>,
    %cst_53 = arith.constant 0.000000e+00 : f32
    %84 = vector.broadcast %cst_53 : f32 to vector<15x16xf32>
    %c241 = arith.constant 241 : index
    %c0_54 = arith.constant 0 : index
    %85 = vector.load %arg4[%c241, %c0_54] : memref<256x16xf32, #tpu.memory_space<vmem>>, vector<15x16xf32>
    tpu.vector_store %arg4[%c241, %c0_54], %84 {strides = array<i32>} : memref<256x16xf32, #tpu.memory_space<vmem>>, vector<15x16xf32>,
    %c0_55 = arith.constant 0 : index
    %c0_56 = arith.constant 0 : index
    %86 = vector.load %arg1[%c0_55, %c0_56] : memref<64x256xf32, #tpu.memory_space<vmem>>, vector<64x256xf32>
    %c0_57 = arith.constant 0 : index
    %c0_58 = arith.constant 0 : index
    %87 = vector.load %arg4[%c0_57, %c0_58] : memref<256x16xf32, #tpu.memory_space<vmem>>, vector<256x16xf32>
    %cst_59 = arith.constant dense<0.000000e+00> : vector<64x16xf32>
    %88 = tpu.matmul %86, %87, %cst_59 {dimension_numbers = #tpu.dot_dimension_numbers<[1], [0], [0], [1], [0, 0, 1, 1], [], []>} : vector<64x256xf32>, vector<256x16xf32>, vector<64x16xf32> -> vector<64x16xf32>
    %89 = vector.extract_strided_slice %88 {offsets = [0, 0], sizes = [8, 16], strides = [1, 1]} : vector<64x16xf32> to vector<8x16xf32>
    %c0_60 = arith.constant 0 : index
    %c0_61 = arith.constant 0 : index
    %c0_62 = arith.constant 0 : index
    %90 = vector.load %arg3[%c0_60, %c0_61, %c0_62] : memref<8x8x16xf32, #tpu.memory_space<vmem>>, vector<1x8x16xf32>
    %91 = vector.shape_cast %90 : vector<1x8x16xf32> to vector<8x16xf32>
    %92 = vector.shape_cast %89 : vector<8x16xf32> to vector<1x8x16xf32>
    tpu.vector_store %arg3[%c0_60, %c0_61, %c0_62], %92 {strides = array<i32>} : memref<8x8x16xf32, #tpu.memory_space<vmem>>, vector<1x8x16xf32>,
    %93 = vector.extract_strided_slice %88 {offsets = [8, 0], sizes = [8, 16], strides = [1, 1]} : vector<64x16xf32> to vector<8x16xf32>
    %c1_63 = arith.constant 1 : index
    %c0_64 = arith.constant 0 : index
    %c0_65 = arith.constant 0 : index
    %94 = vector.load %arg3[%c1_63, %c0_64, %c0_65] : memref<8x8x16xf32, #tpu.memory_space<vmem>>, vector<1x8x16xf32>
    %95 = vector.shape_cast %94 : vector<1x8x16xf32> to vector<8x16xf32>
    %96 = vector.shape_cast %93 : vector<8x16xf32> to vector<1x8x16xf32>
    tpu.vector_store %arg3[%c1_63, %c0_64, %c0_65], %96 {strides = array<i32>} : memref<8x8x16xf32, #tpu.memory_space<vmem>>, vector<1x8x16xf32>,
    %97 = vector.extract_strided_slice %88 {offsets = [16, 0], sizes = [8, 16], strides = [1, 1]} : vector<64x16xf32> to vector<8x16xf32>
    %c2_66 = arith.constant 2 : index
    %c0_67 = arith.constant 0 : index
    %c0_68 = arith.constant 0 : index
    %98 = vector.load %arg3[%c2_66, %c0_67, %c0_68] : memref<8x8x16xf32, #tpu.memory_space<vmem>>, vector<1x8x16xf32>
    %99 = vector.shape_cast %98 : vector<1x8x16xf32> to vector<8x16xf32>
    %100 = vector.shape_cast %97 : vector<8x16xf32> to vector<1x8x16xf32>
    tpu.vector_store %arg3[%c2_66, %c0_67, %c0_68], %100 {strides = array<i32>} : memref<8x8x16xf32, #tpu.memory_space<vmem>>, vector<1x8x16xf32>,
    %101 = vector.extract_strided_slice %88 {offsets = [24, 0], sizes = [8, 16], strides = [1, 1]} : vector<64x16xf32> to vector<8x16xf32>
    %c3_69 = arith.constant 3 : index
    %c0_70 = arith.constant 0 : index
    %c0_71 = arith.constant 0 : index
    %102 = vector.load %arg3[%c3_69, %c0_70, %c0_71] : memref<8x8x16xf32, #tpu.memory_space<vmem>>, vector<1x8x16xf32>
    %103 = vector.shape_cast %102 : vector<1x8x16xf32> to vector<8x16xf32>
    %104 = vector.shape_cast %101 : vector<8x16xf32> to vector<1x8x16xf32>
    tpu.vector_store %arg3[%c3_69, %c0_70, %c0_71], %104 {strides = array<i32>} : memref<8x8x16xf32, #tpu.memory_space<vmem>>, vector<1x8x16xf32>,
    %105 = vector.extract_strided_slice %88 {offsets = [32, 0], sizes = [8, 16], strides = [1, 1]} : vector<64x16xf32> to vector<8x16xf32>
    %c4_72 = arith.constant 4 : index
    %c0_73 = arith.constant 0 : index
    %c0_74 = arith.constant 0 : index
    %106 = vector.load %arg3[%c4_72, %c0_73, %c0_74] : memref<8x8x16xf32, #tpu.memory_space<vmem>>, vector<1x8x16xf32>
    %107 = vector.shape_cast %106 : vector<1x8x16xf32> to vector<8x16xf32>
    %108 = vector.shape_cast %105 : vector<8x16xf32> to vector<1x8x16xf32>
    tpu.vector_store %arg3[%c4_72, %c0_73, %c0_74], %108 {strides = array<i32>} : memref<8x8x16xf32, #tpu.memory_space<vmem>>, vector<1x8x16xf32>,
    %109 = vector.extract_strided_slice %88 {offsets = [40, 0], sizes = [8, 16], strides = [1, 1]} : vector<64x16xf32> to vector<8x16xf32>
    %c5 = arith.constant 5 : index
    %c0_75 = arith.constant 0 : index
    %c0_76 = arith.constant 0 : index
    %110 = vector.load %arg3[%c5, %c0_75, %c0_76] : memref<8x8x16xf32, #tpu.memory_space<vmem>>, vector<1x8x16xf32>
    %111 = vector.shape_cast %110 : vector<1x8x16xf32> to vector<8x16xf32>
    %112 = vector.shape_cast %109 : vector<8x16xf32> to vector<1x8x16xf32>
    tpu.vector_store %arg3[%c5, %c0_75, %c0_76], %112 {strides = array<i32>} : memref<8x8x16xf32, #tpu.memory_space<vmem>>, vector<1x8x16xf32>,
    %113 = vector.extract_strided_slice %88 {offsets = [48, 0], sizes = [8, 16], strides = [1, 1]} : vector<64x16xf32> to vector<8x16xf32>
    %c6 = arith.constant 6 : index
    %c0_77 = arith.constant 0 : index
    %c0_78 = arith.constant 0 : index
    %114 = vector.load %arg3[%c6, %c0_77, %c0_78] : memref<8x8x16xf32, #tpu.memory_space<vmem>>, vector<1x8x16xf32>
    %115 = vector.shape_cast %114 : vector<1x8x16xf32> to vector<8x16xf32>
    %116 = vector.shape_cast %113 : vector<8x16xf32> to vector<1x8x16xf32>
    tpu.vector_store %arg3[%c6, %c0_77, %c0_78], %116 {strides = array<i32>} : memref<8x8x16xf32, #tpu.memory_space<vmem>>, vector<1x8x16xf32>,
    %117 = vector.extract_strided_slice %88 {offsets = [56, 0], sizes = [8, 16], strides = [1, 1]} : vector<64x16xf32> to vector<8x16xf32>
    %c7 = arith.constant 7 : index
    %c0_79 = arith.constant 0 : index
    %c0_80 = arith.constant 0 : index
    %118 = vector.load %arg3[%c7, %c0_79, %c0_80] : memref<8x8x16xf32, #tpu.memory_space<vmem>>, vector<1x8x16xf32>
    %119 = vector.shape_cast %118 : vector<1x8x16xf32> to vector<8x16xf32>
    %120 = vector.shape_cast %117 : vector<8x16xf32> to vector<1x8x16xf32>
    tpu.vector_store %arg3[%c7, %c0_79, %c0_80], %120 {strides = array<i32>} : memref<8x8x16xf32, #tpu.memory_space<vmem>>, vector<1x8x16xf32>,
    return
  }
  func.func @transform_0(%arg0: i32) -> (i32, i32) {
    %c0_i32 = arith.constant 0 : i32
    %c0_i32_0 = arith.constant 0 : i32
    %c0_i32_1 = arith.constant 0 : i32
    return %c0_i32, %c0_i32_0 : i32, i32
  }
  func.func @transform_1(%arg0: i32) -> (i32, i32) {
    %c0_i32 = arith.constant 0 : i32
    %c0_i32_0 = arith.constant 0 : i32
    %c0_i32_1 = arith.constant 0 : i32
    return %c0_i32, %c0_i32_0 : i32, i32
  }
  func.func @transform_2(%arg0: i32) -> (i32, i32, i32) {
    %c0_i32 = arith.constant 0 : i32
    %c0_i32_0 = arith.constant 0 : i32
    %c0_i32_1 = arith.constant 0 : i32
    return %c0_i32, %arg0, %c0_i32_0 : i32, i32, i32
  }
}

</mosaic_0001>

<bundles_post_ra>
// kernel: mfconv_forward.1
= control target key start
LH: loop header
LB: loop body
LE: loop exit
PB: predicated region body
PF: predicated region fallthrough
CT: control target
= control target key end

     0   :  { %s856_s9 = smov 0   ;;  %s858_s10 = smov 0   ;;  %s1075_s0 = inlined_call_operand.vmem [shape: f32[64,256], index: 0, kind: input, shape index: {}]   ;;  %s1076_s1 = inlined_call_operand.vmem [shape: f32[80,20], index: 1, kind: input, shape index: {}]   ;;  %s1077_s2 = inlined_call_operand.vmem [shape: f32[8,16,16], index: 2, kind: output, shape index: {}]  }
   0x1   :  { %s860_s11 = smov 0  }
   0x2 LB: > { %s627_s12 = sadd.s32 4294967295, %s833_s11   ;;  %s869_s13 = sadd.s32 1, %s833_s11   ;;  %s833_s11 = sphi %s860_s11, %s1081_s11   ;;  %s829_s10 = sphi %s858_s10, %s1080_s10   ;;  %s825_s9 = sphi %s856_s9, %s1079_s9  }
   0x3   : > { %s58_s14 = ssub.s32 %s833_s11, %s869_s13  ;;  %s61_s15 = sadd.s32 1, %s829_s10 }
   0x4   : > { %p59_p0 = scmp.eq.s32.totalorder %s58_s14, 0  ;;  %p71_p1 = scmp.ne.s32.totalorder %s829_s10, %s825_s9 }
   0x5   : > { %p72_p2 = scmp.eq.s32.totalorder %s627_s12, 1  ;;  %p630_p3 = scmp.ge.s32.totalorder %s833_s11, 1 }
   0x6   : > { %s876_s16 = scalar_select %p59_p0, %s829_s10, %s61_s15  }
   0x7   : > { %p878_p4 = por %p72_p2, %p71_p1  ;;  %p102_p5 = scmp.lt.s32.totalorder %s833_s11, 3 }
   0x9   : > { %p103_p6 = pnand %p630_p3, %p102_p5 }
   0xa   : > { %s882_s18 = sshll.u32 (!%p103_p6), %s627_s12, 3  ;;  %vm122_vm0 = vcmask (!%p103_p6), 130048   ;;  %s835_s22 = smov (!%p103_p6), 126   ;;  %vm124_vm1 = vcmask (!%p103_p6), 125952   ;;  %vm336_vm2 = vcmask (!%p103_p6), 122880   ;;  %vm339_vm3 = vcmask (!%p103_p6), 129024  }
   0xb   : > { %106 = sbr.rel (%p103_p6) target bundleno = 439 (0x1b7), region = 28  ;;  %s888_s21 = scalar_lea.vmem (!%p103_p6), %s1076_s1, %s882_s18  ;;  %v839_v21 = vmov (!%p103_p6), 1.0   ;;  %v840_v22 = vmov (!%p103_p6), 0.0   ;;  %v342_v26 = vld [vmem:[%s1075_s0 + $0x8] sm:$0xff] (!%p103_p6) }
   0xc   : > { %v653_v0 = vld [vmem:[%s888_s21 + $0x44] sm:$0xf] (!%p103_p6)  ;;  %v651_v1 = vld [vmem:[%s888_s21 + $0x30] sm:$0xf] (!%p103_p6)  ;;  %v652_v3 = vld [vmem:[%s888_s21 + $0x3c] sm:$0xff] (!%p103_p6)  ;;  %s836_s23 = smov (!%p103_p6), 125   ;;  %453 = vmatprep.mubr.f32.mxu0 (!%p103_p6), %v342_v26 }
   0xd   : > { %v893_v2 = vld [vmem:[%s888_s21] sm:$0xff] (!%p103_p6)  ;;  %234 = vrot.lane.b32.xlu1 (!%p103_p6), %v653_v0, %s835_s22  ;;  %222 = vrot.lane.b32.xlu0 (!%p103_p6), %v651_v1, %s835_s22  ;;  %v899_v4 = vld [vmem:[%s888_s21 + $0x14] sm:$0xff] (!%p103_p6)  ;;  %142 = vst.msk [vmem:[#allocation2 + $0x24] sm:$0xff] (!%p103_p6), %vm122_vm0, %v652_v3  ;;  %s837_s24 = smov (!%p103_p6), 127   ;;  %s838_s25 = smov (!%p103_p6), 124   ;;  %338 = vst.msk [vmem:[#allocation2 + $0xf1] sm:$0xff] (!%p103_p6), %vm122_vm0, %v840_v22 }
   0xe   : > { %123 = vst.msk [vmem:[#allocation2] sm:$0xff] (!%p103_p6), %vm122_vm0, %v893_v2  ;;  %v904_v5 = vld [vmem:[%s888_s21 + $0x28] sm:$0xff] (!%p103_p6)  ;;  %130 = vst.msk [vmem:[#allocation2 + $0xc] sm:$0xff] (!%p103_p6), %vm122_vm0, %v899_v4  ;;  %v635_v8 = vld [vmem:[%s888_s21 + $0x1c] sm:$0xf] (!%p103_p6)  ;;  %s115_s8 = sand.u32 (!%p103_p6), 1, %s825_s9  }
   0xf   : > { %136 = vst.msk [vmem:[#allocation2 + $0x18] sm:$0xff] (!%p103_p6), %vm122_vm0, %v904_v5  ;;  %v241_v6 = vld [vmem:[%s888_s21 + $0x8] sm:$0xf] (!%p103_p6)  ;;  %v638_v9 = vld [vmem:[%s888_s21 + $0x30] sm:$0xf] (!%p103_p6)  ;;  %s631_s11 = sshll.u32 (!%p103_p6), %s115_s8, 6 }
  0x10   : > { %v121_v7 = vld [vmem:[%s888_s21 + $0x8] sm:$0xf] (!%p103_p6)  ;;  %131 = vst.msk [vmem:[#allocation2 + $0x14] sm:$0xf] (!%p103_p6), %vm124_vm1, %v635_v8  ;;  %v641_v10 = vld [vmem:[%s888_s21 + $0x44] sm:$0xf] (!%p103_p6) }
  0x11   : > { %244 = vrot.lane.b32.xlu1 (!%p103_p6), %v893_v2, %s836_s23  ;;  %232 = vrot.lane.b32.xlu0 (!%p103_p6), %v652_v3, %s835_s22  ;;  %125 = vst.msk [vmem:[#allocation2 + $0x8] sm:$0xf] (!%p103_p6), %vm124_vm1, %v121_v7  ;;  %137 = vst.msk [vmem:[#allocation2 + $0x20] sm:$0xf] (!%p103_p6), %vm124_vm1, %v638_v9  ;;  %v655_v11 = vld [vmem:[%s888_s21 + $0x1c] sm:$0xf] (!%p103_p6) }
  0x12   : > { %143 = vst.msk [vmem:[#allocation2 + $0x2c] sm:$0xf] %vm124_vm1, %v641_v10  ;;  %v657_v12 = vld [vmem:[%s888_s21 + $0x30] sm:$0xf]  ;;  %v659_v13 = vld [vmem:[%s888_s21 + $0x44] sm:$0xf]  ;;  %s517_s15 = scalar_lea.vmem (%p878_p4), %s1077_s2, %s882_s18 }
  0x13   : > { %v145_v14 = vld [vmem:[%s888_s21 + $0x8] sm:$0xf]  ;;  %v643_v16 = vld [vmem:[%s888_s21 + $0x1c] sm:$0xf]  ;;  %v645_v18 = vld [vmem:[%s888_s21 + $0x30] sm:$0xf] }
  0x14   : > { %v289_v15 = vld [vmem:[%s888_s21 + $0x8] sm:$0xf]  ;;  %v661_v17 = vld [vmem:[%s888_s21 + $0x1c] sm:$0xf]  ;;  %v647_v19 = vld [vmem:[%s888_s21 + $0x44] sm:$0xf] }
  0x15   : > { %256 = vrot.lane.b32.xlu1 %v899_v4, %s836_s23  ;;  %246 = vrot.lane.b32.xlu0 %v241_v6, %s836_s23  ;;  %v663_v20 = vld [vmem:[%s888_s21 + $0x30] sm:$0xf]  ;;  %337 = vst.msk [vmem:[#allocation2 + $0xf0] sm:$0x1] %vm336_vm2, %v839_v21  ;;  %v665_v23 = vld [vmem:[%s888_s21 + $0x44] sm:$0xf] }
  0x16   : > { %340 = vst.msk [vmem:[#allocation2 + $0xf9] sm:$0x7f] %vm339_vm3, %v840_v22  ;;  %v193_v24 = vld [vmem:[%s888_s21 + $0x8] sm:$0xf]  ;;  %v649_v25 = vld [vmem:[%s888_s21 + $0x1c] sm:$0xf] }
  0x17   : > { %v350_v27 = vld [vmem:[%s1075_s0 + $0x48] sm:$0xff]  ;;  %v357_v34 = vld [vmem:[#allocation2] sm:$0xff]  ;;  %v359_v42 = vld [vmem:[#allocation2 + $0x10] sm:$0xff]  ;;  %s1033_s12 = scalar_lea.vmem [#allocation3], %s631_s11 }
  0x18   : > { %473 = vmatprep.mubr.f32.mxu1 %v350_v27  ;;  %v358_v35 = vld [vmem:[#allocation2 + $0x8] sm:$0xff]  ;;  %v360_v43 = vld [vmem:[#allocation2 + $0x18] sm:$0xff]  ;;  %v361_v50 = vld [vmem:[#allocation2 + $0x20] sm:$0xff] }
  0x19   : > { %268 = vrot.lane.b32.xlu1 %v904_v5, %s836_s23  ;;  %258 = vrot.lane.b32.xlu0 %v655_v11, %s836_s23  ;;  %v735_v40 = vpack.c.bf16 %v358_v35, %v357_v34  ;;  %v739_v48 = vpack.c.bf16 %v360_v43, %v359_v42  ;;  %v362_v51 = vld [vmem:[#allocation2 + $0x28] sm:$0xff] }
  0x1a   : > { %v743_v56 = vpack.c.bf16 %v362_v51, %v361_v50  ;;  %v346_v50 = vld [vmem:[%s1075_s0 + $0x28] sm:$0xff] }
  0x1b   : > { %v354_v51 = vld [vmem:[%s1075_s0 + $0x68] sm:$0xff] }
  0x1c   : > { %v387_v35 = vld [vmem:[#allocation2 + $0xf0] sm:$0xff] }
  0x1d   : > { %280 = vrot.lane.b32.xlu1 %v652_v3, %s836_s23  ;;  %270 = vrot.lane.b32.xlu0 %v657_v12, %s836_s23 }
  0x21   : > { %282 = vrot.lane.b32.xlu0 %v659_v13, %s836_s23  ;;  %148 = vrot.lane.b32.xlu1 %v893_v2, %s837_s24 }
  0x25   : > { %150 = vrot.lane.b32.xlu0 %v145_v14, %s837_s24  ;;  %160 = vrot.lane.b32.xlu1 %v899_v4, %s837_s24 }
  0x29   : > { %292 = vrot.lane.b32.xlu0 %v893_v2, %s838_s25  ;;  %294 = vrot.lane.b32.xlu1 %v289_v15, %s838_s25 }
  0x2d   : > { %304 = vrot.lane.b32.xlu0 %v899_v4, %s838_s25  ;;  %162 = vrot.lane.b32.xlu1 %v643_v16, %s837_s24 }
  0x31   : > { %172 = vrot.lane.b32.xlu0 %v904_v5, %s837_s24  ;;  %306 = vrot.lane.b32.xlu1 %v661_v17, %s838_s25 }
  0x35   : > { %316 = vrot.lane.b32.xlu0 %v904_v5, %s838_s25  ;;  %174 = vrot.lane.b32.xlu1 %v645_v18, %s837_s24 }
  0x39   : > { %184 = vrot.lane.b32.xlu0 %v652_v3, %s837_s24  ;;  %186 = vrot.lane.b32.xlu1 %v647_v19, %s837_s24 }
  0x3d   : > { %318 = vrot.lane.b32.xlu0 %v663_v20, %s838_s25  ;;  %328 = vrot.lane.b32.xlu1 %v652_v3, %s838_s25 }
  0x41   : > { %330 = vrot.lane.b32.xlu0 %v665_v23, %s838_s25  ;;  %196 = vrot.lane.b32.xlu1 %v893_v2, %s835_s22 }
  0x45   : > { %198 = vrot.lane.b32.xlu0 %v193_v24, %s835_s22  ;;  %208 = vrot.lane.b32.xlu1 %v899_v4, %s835_s22 }
  0x49   : > { %210 = vrot.lane.b32.xlu0 %v649_v25, %s835_s22  ;;  %220 = vrot.lane.b32.xlu1 %v904_v5, %s835_s22 }
  0x7f   : > { %v235_v28 = vpop.permute.xlu1 %234  ;;  %v223_v29 = vpop.permute.xlu0 %222 }
  0x80   : > { %239 = vst.msk [vmem:[#allocation2 + $0x8c] sm:$0xf] %vm124_vm1, %v235_v28  ;;  %227 = vst.msk [vmem:[#allocation2 + $0x80] sm:$0xf] %vm124_vm1, %v223_v29 }
  0x83   : > { %v245_v30 = vpop.permute.xlu1 %244  ;;  %v233_v31 = vpop.permute.xlu0 %232 }
  0x84   : > { %250 = vst.msk [vmem:[#allocation2 + $0x90] sm:$0xff] %vm122_vm0, %v245_v30  ;;  %238 = vst.msk [vmem:[#allocation2 + $0x84] sm:$0xff] %vm122_vm0, %v233_v31 }
  0x87   : > { %v257_v32 = vpop.permute.xlu1 %256  ;;  %v247_v33 = vpop.permute.xlu0 %246 }
  0x88   : > { %262 = vst.msk [vmem:[#allocation2 + $0x9c] sm:$0xff] %vm122_vm0, %v257_v32 }
  0x89   : > { %251 = vst.msk [vmem:[#allocation2 + $0x98] sm:$0xf] %vm124_vm1, %v247_v33 }
  0x8b   : > { %v269_v36 = vpop.permute.xlu1 %268  ;;  %v259_v37 = vpop.permute.xlu0 %258  ;;  %v373_v38 = vld [vmem:[#allocation2 + $0x80] sm:$0xff]  ;;  %v374_v39 = vld [vmem:[#allocation2 + $0x88] sm:$0xff]  ;;  %v375_v46 = vld [vmem:[#allocation2 + $0x90] sm:$0xff] }
  0x8c   : > { %274 = vst.msk [vmem:[#allocation2 + $0xa8] sm:$0xff] %vm122_vm0, %v269_v36  ;;  %v733_v41 = vpack.c.bf16 %v374_v39, %v373_v38  ;;  %v388_v36 = vld [vmem:[#allocation2 + $0xf8] sm:$0xff] }
  0x8d   : > { %263 = vst.msk [vmem:[#allocation2 + $0xa4] sm:$0xf] %vm124_vm1, %v259_v37  ;;  %v761_v39 = vpack.c.bf16 %v388_v36, %v387_v35 }
  0x8e   : > { %734 = vmatprep.subr.bf16.mxu0 %v733_v41  ;;  %765 = vmatprep.subr.bf16.mxu1 %v733_v41 }
  0x8f   : > { %v281_v44 = vpop.permute.xlu1 %280  ;;  %v271_v45 = vpop.permute.xlu0 %270  ;;  %736 = vmatpush3.bf16.msra.mxu0 %v735_v40  ;;  %773 = vmatpush3.bf16.msra.mxu1 %v735_v40 }
  0x90   : > { %v376_v47 = vld [vmem:[#allocation2 + $0x98] sm:$0xff]  ;;  %286 = vst.msk [vmem:[#allocation2 + $0xb4] sm:$0xff] %vm122_vm0, %v281_v44  ;;  %v341_v44 = vld [vmem:[%s1075_s0] sm:$0xff] }
  0x91   : > { %275 = vst.msk [vmem:[#allocation2 + $0xb0] sm:$0xf] %vm124_vm1, %v271_v45  ;;  %v737_v49 = vpack.c.bf16 %v376_v47, %v375_v46  ;;  %v349_v45 = vld [vmem:[%s1075_s0 + $0x40] sm:$0xff]  ;;  %v344_v46 = vld [vmem:[%s1075_s0 + $0x18] sm:$0xff] }
  0x92   : > { %v352_v47 = vld [vmem:[%s1075_s0 + $0x58] sm:$0xff] }
  0x93   : > { %738 = vmatprep.subr.bf16.mxu0 %v737_v49  ;;  %766 = vmatprep.subr.bf16.mxu1 %v737_v49  ;;  %v283_v52 = vpop.permute.xlu0 %282  ;;  %v149_v53 = vpop.permute.xlu1 %148  ;;  %v378_v55 = vld [vmem:[#allocation2 + $0xa8] sm:$0xff]  ;;  %v351_v49 = vld [vmem:[%s1075_s0 + $0x50] sm:$0xff] }
  0x94   : > { %740 = vmatpush3.bf16.msra.mxu0 %v739_v48  ;;  %774 = vmatpush3.bf16.msra.mxu1 %v739_v48  ;;  %v377_v54 = vld [vmem:[#allocation2 + $0xa0] sm:$0xff]  ;;  %287 = vst.msk [vmem:[#allocation2 + $0xbc] sm:$0xf] %vm124_vm1, %v283_v52  ;;  %v343_v48 = vld [vmem:[%s1075_s0 + $0x10] sm:$0xff] }
  0x95   : > { %154 = vst.msk [vmem:[#allocation2 + $0x30] sm:$0xff] %vm122_vm0, %v149_v53  ;;  %v741_v57 = vpack.c.bf16 %v378_v55, %v377_v54  ;;  %v345_v52 = vld [vmem:[%s1075_s0 + $0x20] sm:$0xff]  ;;  %v348_v54 = vld [vmem:[%s1075_s0 + $0x38] sm:$0xff] }
  0x96   : > { %v353_v53 = vld [vmem:[%s1075_s0 + $0x60] sm:$0xff]  ;;  %v356_v55 = vld [vmem:[%s1075_s0 + $0x78] sm:$0xff] }
  0x97   : > { %742 = vmatprep.subr.bf16.mxu0 %v741_v57  ;;  %767 = vmatprep.subr.bf16.mxu1 %v741_v57  ;;  %v151_v58 = vpop.permute.xlu0 %150  ;;  %v161_v59 = vpop.permute.xlu1 %160  ;;  %v355_v57 = vld [vmem:[%s1075_s0 + $0x70] sm:$0xff] }
  0x98   : > { %744 = vmatpush3.bf16.msra.mxu0 %v743_v56  ;;  %775 = vmatpush3.bf16.msra.mxu1 %v743_v56  ;;  %155 = vst.msk [vmem:[#allocation2 + $0x38] sm:$0xf] %vm124_vm1, %v151_v58  ;;  %v379_v62 = vld [vmem:[#allocation2 + $0xb0] sm:$0xff] }
  0x99   : > { %166 = vst.msk [vmem:[#allocation2 + $0x3c] sm:$0xff] %vm122_vm0, %v161_v59  ;;  %v347_v56 = vld [vmem:[%s1075_s0 + $0x30] sm:$0xff] }
  0x9b   : > { %v293_v60 = vpop.permute.xlu0 %292  ;;  %v295_v61 = vpop.permute.xlu1 %294  ;;  %v380_v63 = vld [vmem:[#allocation2 + $0xb8] sm:$0xff] }
  0x9c   : > { %298 = vst.msk [vmem:[#allocation2 + $0xc0] sm:$0xff] %vm122_vm0, %v293_v60  ;;  %v745_v0 = vpack.c.bf16 %v380_v63, %v379_v62  ;;  %v363_v3 = vld [vmem:[#allocation2 + $0x30] sm:$0xff] }
  0x9d   : > { %299 = vst.msk [vmem:[#allocation2 + $0xc8] sm:$0xf] %vm124_vm1, %v295_v61 }
  0x9e   : > { %746 = vmatprep.subr.bf16.mxu0 %v745_v0  ;;  %768 = vmatprep.subr.bf16.mxu1 %v745_v0 }
  0x9f   : > { %v305_v1 = vpop.permute.xlu0 %304  ;;  %v163_v2 = vpop.permute.xlu1 %162 }
  0xa0   : > { %v364_v4 = vld [vmem:[#allocation2 + $0x38] sm:$0xff]  ;;  %310 = vst.msk [vmem:[#allocation2 + $0xcc] sm:$0xff] %vm122_vm0, %v305_v1 }
  0xa1   : > { %167 = vst.msk [vmem:[#allocation2 + $0x44] sm:$0xf] %vm124_vm1, %v163_v2  ;;  %v747_v5 = vpack.c.bf16 %v364_v4, %v363_v3 }
  0xa3   : > { %748 = vmatpush3.bf16.msra.mxu0 %v747_v5  ;;  %776 = vmatpush3.bf16.msra.mxu1 %v747_v5  ;;  %v173_v6 = vpop.permute.xlu0 %172  ;;  %v307_v7 = vpop.permute.xlu1 %306  ;;  %v381_v10 = vld [vmem:[#allocation2 + $0xc0] sm:$0xff] }
  0xa4   : > { %178 = vst.msk [vmem:[#allocation2 + $0x48] sm:$0xff] %vm122_vm0, %v173_v6 }
  0xa5   : > { %311 = vst.msk [vmem:[#allocation2 + $0xd4] sm:$0xf] %vm124_vm1, %v307_v7 }
  0xa7   : > { %v317_v8 = vpop.permute.xlu0 %316  ;;  %v175_v9 = vpop.permute.xlu1 %174  ;;  %v382_v11 = vld [vmem:[#allocation2 + $0xc8] sm:$0xff] }
  0xa8   : > { %322 = vst.msk [vmem:[#allocation2 + $0xd8] sm:$0xff] %vm122_vm0, %v317_v8  ;;  %v749_v12 = vpack.c.bf16 %v382_v11, %v381_v10  ;;  %v365_v15 = vld [vmem:[#allocation2 + $0x40] sm:$0xff] }
  0xa9   : > { %179 = vst.msk [vmem:[#allocation2 + $0x50] sm:$0xf] %vm124_vm1, %v175_v9 }
  0xaa   : > { %750 = vmatprep.subr.bf16.mxu0 %v749_v12  ;;  %769 = vmatprep.subr.bf16.mxu1 %v749_v12 }
  0xab   : > { %v185_v13 = vpop.permute.xlu0 %184  ;;  %v187_v14 = vpop.permute.xlu1 %186  ;;  %v366_v16 = vld [vmem:[#allocation2 + $0x48] sm:$0xff] }
  0xac   : > { %190 = vst.msk [vmem:[#allocation2 + $0x54] sm:$0xff] %vm122_vm0, %v185_v13  ;;  %v751_v17 = vpack.c.bf16 %v366_v16, %v365_v15  ;;  %v383_v20 = vld [vmem:[#allocation2 + $0xd0] sm:$0xff] }
  0xad   : > { %191 = vst.msk [vmem:[#allocation2 + $0x5c] sm:$0xf] %vm124_vm1, %v187_v14 }
  0xae   : > { %752 = vmatpush3.bf16.msra.mxu0 %v751_v17  ;;  %777 = vmatpush3.bf16.msra.mxu1 %v751_v17 }
  0xaf   : > { %v319_v18 = vpop.permute.xlu0 %318  ;;  %v329_v19 = vpop.permute.xlu1 %328  ;;  %v384_v21 = vld [vmem:[#allocation2 + $0xd8] sm:$0xff] }
  0xb0   : > { %323 = vst.msk [vmem:[#allocation2 + $0xe0] sm:$0xf] %vm124_vm1, %v319_v18  ;;  %v753_v22 = vpack.c.bf16 %v384_v21, %v383_v20 }
  0xb1   : > { %334 = vst.msk [vmem:[#allocation2 + $0xe4] sm:$0xff] %vm122_vm0, %v329_v19 }
  0xb2   : > { %754 = vmatprep.subr.bf16.mxu0 %v753_v22  ;;  %770 = vmatprep.subr.bf16.mxu1 %v753_v22 }
  0xb3   : > { %v331_v23 = vpop.permute.xlu0 %330  ;;  %v197_v24 = vpop.permute.xlu1 %196  ;;  %v367_v25 = vld [vmem:[#allocation2 + $0x50] sm:$0xff] }
  0xb4   : > { %v368_v26 = vld [vmem:[#allocation2 + $0x58] sm:$0xff]  ;;  %335 = vst.msk [vmem:[#allocation2 + $0xec] sm:$0xf] %vm124_vm1, %v331_v23 }
  0xb5   : > { %202 = vst.msk [vmem:[#allocation2 + $0x60] sm:$0xff] %vm122_vm0, %v197_v24  ;;  %v755_v27 = vpack.c.bf16 %v368_v26, %v367_v25 }
  0xb7   : > { %756 = vmatpush3.bf16.msra.mxu0 %v755_v27  ;;  %778 = vmatpush3.bf16.msra.mxu1 %v755_v27  ;;  %v199_v28 = vpop.permute.xlu0 %198  ;;  %v209_v29 = vpop.permute.xlu1 %208 }
  0xb8   : > { %203 = vst.msk [vmem:[#allocation2 + $0x68] sm:$0xf] %vm124_vm1, %v199_v28  ;;  %v385_v32 = vld [vmem:[#allocation2 + $0xe0] sm:$0xff] }
  0xb9   : > { %214 = vst.msk [vmem:[#allocation2 + $0x6c] sm:$0xff] %vm122_vm0, %v209_v29 }
  0xbb   : > { %v211_v30 = vpop.permute.xlu0 %210  ;;  %v221_v31 = vpop.permute.xlu1 %220  ;;  %v386_v33 = vld [vmem:[#allocation2 + $0xe8] sm:$0xff] }
  0xbc   : > { %215 = vst.msk [vmem:[#allocation2 + $0x74] sm:$0xf] %vm124_vm1, %v211_v30  ;;  %v757_v34 = vpack.c.bf16 %v386_v33, %v385_v32  ;;  %v369_v37 = vld [vmem:[#allocation2 + $0x60] sm:$0xff] }
  0xbd   : > { %226 = vst.msk [vmem:[#allocation2 + $0x78] sm:$0xff] %vm122_vm0, %v221_v31 }
  0xbe   : > { %758 = vmatprep.subr.bf16.mxu0 %v757_v34  ;;  %771 = vmatprep.subr.bf16.mxu1 %v757_v34 }
  0xc0   : > { %v370_v38 = vld [vmem:[#allocation2 + $0x68] sm:$0xff] }
  0xc1   : > { %v759_v40 = vpack.c.bf16 %v370_v38, %v369_v37 }
  0xc3   : > { %760 = vmatpush3.bf16.msra.mxu0 %v759_v40  ;;  %779 = vmatpush3.bf16.msra.mxu1 %v759_v40  ;;  %v371_v41 = vld [vmem:[#allocation2 + $0x70] sm:$0xff] }
  0xc4   : > { %762 = vmatprep.subr.bf16.mxu0 %v761_v39  ;;  %772 = vmatprep.subr.bf16.mxu1 %v761_v39  ;;  %v372_v42 = vld [vmem:[#allocation2 + $0x78] sm:$0xff] }
  0xc5   : > { %v763_v43 = vpack.c.bf16 %v372_v42, %v371_v41 }
  0xc7   : > { %764 = vmatpush3.bf16.msra.mxu0 %v763_v43  ;;  %780 = vmatpush3.bf16.msra.mxu1 %v763_v43 }
  0xca   : > { %454 = vmatmul.mubr.f32.vlgmr.msra.gmra.mrb[0].mxu0 %v341_v44  ;;  %474 = vmatmul.mubr.f32.vlgmr.msra.gmra.mrb[0].mxu1 %v349_v45 }
  0xcb   : > { %458 = vmatprep.mubr.f32.mxu0 %v344_v46  ;;  %478 = vmatprep.mubr.f32.mxu1 %v352_v47 }
  0xce   : > { %459 = vmatmul.mubr.f32.gmra.mrb[2].mxu0 %v343_v48  ;;  %479 = vmatmul.mubr.f32.gmra.mrb[2].mxu1 %v351_v49 }
  0xcf   : > { %463 = vmatprep.mubr.f32.mxu0 %v346_v50  ;;  %483 = vmatprep.mubr.f32.mxu1 %v354_v51 }
  0xd2   : > { %464 = vmatmul.mubr.f32.gmra.mrb[4].mxu0 %v345_v52  ;;  %484 = vmatmul.mubr.f32.gmra.mrb[4].mxu1 %v353_v53 }
  0xd3   : > { %468 = vmatprep.mubr.f32.mxu0 %v348_v54  ;;  %488 = vmatprep.mubr.f32.mxu1 %v356_v55 }
  0xd6   : > { %469 = vmatmul.mubr.f32.gmra.mrb[6].mxu0 %v347_v56  ;;  %489 = vmatmul.mubr.f32.gmra.mrb[6].mxu1 %v355_v57 }
 0x19d   : > { %v709_v58 = vpop.f32.mrb[0].mxu0  ;;  %v721_v59 = vpop.f32.mrb[0].mxu1 }
 0x19e   : > { %v710_v60 = vpop.f32.mrb[1].mxu0  ;;  %v722_v61 = vpop.f32.mrb[1].mxu1 }
 0x19f   : > { %v711_v62 = vadd.f32 %v710_v60, %v709_v58  ;;  %v723_v63 = vadd.f32 %v722_v61, %v721_v59 }
 0x1a1   : > { %494 = vst.msk [vmem:[%s1033_s12] sm:$0xff] %vm122_vm0, %v711_v62  ;;  %669 = vst.msk [vmem:[%s1033_s12 + $0x20] sm:$0xff] %vm122_vm0, %v723_v63  ;;  %v712_v0 = vpop.f32.mrb[2].mxu0  ;;  %v724_v1 = vpop.f32.mrb[2].mxu1 }
 0x1a2   : > { %v713_v2 = vpop.f32.mrb[3].mxu0  ;;  %v725_v3 = vpop.f32.mrb[3].mxu1 }
 0x1a3   : > { %v714_v4 = vadd.f32 %v713_v2, %v712_v0  ;;  %v726_v5 = vadd.f32 %v725_v3, %v724_v1 }
 0x1a5   : > { %666 = vst.msk [vmem:[%s1033_s12 + $0x8] sm:$0xff] %vm122_vm0, %v714_v4  ;;  %670 = vst.msk [vmem:[%s1033_s12 + $0x28] sm:$0xff] %vm122_vm0, %v726_v5  ;;  %v715_v6 = vpop.f32.mrb[4].mxu0  ;;  %v727_v7 = vpop.f32.mrb[4].mxu1 }
 0x1a6   : > { %v716_v8 = vpop.f32.mrb[5].mxu0  ;;  %v728_v9 = vpop.f32.mrb[5].mxu1 }
 0x1a7   : > { %v717_v10 = vadd.f32 %v716_v8, %v715_v6  ;;  %v729_v11 = vadd.f32 %v728_v9, %v727_v7  ;;  %515 = sbr.rel (!%p878_p4) target bundleno = 439 (0x1b7), region = 32 }
 0x1a8   : > { %v559_v18 = vld [vmem:[%s1033_s12] sm:$0xff] (%p878_p4) }
 0x1a9   : > { %667 = vst.msk [vmem:[%s1033_s12 + $0x10] sm:$0xff] %vm122_vm0, %v717_v10  ;;  %671 = vst.msk [vmem:[%s1033_s12 + $0x30] sm:$0xff] %vm122_vm0, %v729_v11  ;;  %v718_v12 = vpop.f32.mrb[6].mxu0  ;;  %v730_v13 = vpop.f32.mrb[6].mxu1  ;;  %v567_v22 = vld [vmem:[%s1033_s12 + $0x20] sm:$0xff] (%p878_p4) }
 0x1aa   : > { %v719_v14 = vpop.f32.mrb[7].mxu0  ;;  %v731_v15 = vpop.f32.mrb[7].mxu1  ;;  %560 = vst [vmem:[%s517_s15] sm:$0xff] (%p878_p4), %v559_v18  ;;  %568 = vst [vmem:[%s517_s15 + $0x40] sm:$0xff] (%p878_p4), %v567_v22 }
 0x1ab   : > { %v720_v16 = vadd.f32 %v719_v14, %v718_v12  ;;  %v732_v17 = vadd.f32 %v731_v15, %v730_v13 }
 0x1ac   : > { %v561_v19 = vld [vmem:[%s1033_s12 + $0x8] sm:$0xff] (%p878_p4) }
 0x1ad   : > { %668 = vst.msk [vmem:[%s1033_s12 + $0x18] sm:$0xff] %vm122_vm0, %v720_v16  ;;  %672 = vst.msk [vmem:[%s1033_s12 + $0x38] sm:$0xff] %vm122_vm0, %v732_v17  ;;  %v569_v23 = vld [vmem:[%s1033_s12 + $0x28] sm:$0xff] (%p878_p4) }
 0x1ae   : > { %562 = vst [vmem:[%s517_s15 + $0x10] sm:$0xff] %v561_v19  ;;  %570 = vst [vmem:[%s517_s15 + $0x50] sm:$0xff] %v569_v23 }
 0x1b0   : > { %v563_v20 = vld [vmem:[%s1033_s12 + $0x10] sm:$0xff] }
 0x1b1   : > { %564 = vst [vmem:[%s517_s15 + $0x20] sm:$0xff] %v563_v20  ;;  %v571_v24 = vld [vmem:[%s1033_s12 + $0x30] sm:$0xff] }
 0x1b2   : > { %572 = vst [vmem:[%s517_s15 + $0x60] sm:$0xff] %v571_v24 }
 0x1b4   : > { %v565_v21 = vld [vmem:[%s1033_s12 + $0x18] sm:$0xff] }
 0x1b5   : > { %566 = vst [vmem:[%s517_s15 + $0x30] sm:$0xff] %v565_v21  ;;  %v573_v25 = vld [vmem:[%s1033_s12 + $0x38] sm:$0xff] }
 0x1b6   : > { %574 = vst [vmem:[%s517_s15 + $0x70] sm:$0xff] %v573_v25 }
 0x1b7 PF: > { %p9_p7 = scmp.ge.s32.totalorder %s869_s13, 4   ;;  %s1079_s9 = smov %s829_s10 }
 0x1b8   : > { %s1080_s10 = smov %s876_s16  ;;  %s1081_s11 = smov %s869_s13 }
 0x1b9   :  { %11 = sbr.rel (!%p9_p7) target bundleno = 2 (0x2), region = 104 }

</bundles_post_ra>
